<compile_context>
chip_gen: v7x
topology: tpu7x:2x2x1
jax: 0.10.0
libtpu: 0.0.40
codegen_flags: <defaults>
</compile_context>

<pallas_src>
import functools
import math

import jax
import jax.numpy as jnp
from jax.experimental import pallas as pl
from jax.experimental.pallas import tpu as pltpu


def _round_up(v, m):
    return -(-v // m) * m


def _vmem_budget():
    """(per-step tile budget, vmem_limit cap) branched on VMEM capacity per TensorCore."""
    try:
        cap = getattr(pltpu.get_tpu_info(), "vmem_capacity_bytes", None)
    except Exception:  # CPU interpret / info unavailable -> stay conservative
        cap = None
    if cap is not None and cap >= (100 << 20):   # v5e / v6e: 128 MiB VMEM per core
        return 48 << 20, 96 << 20
    # v7x (64 MiB per TC) or unknown: conservative budget that is safe everywhere.
    return 24 << 20, 40 << 20


def _step_bytes(tile_s, bc, d_model, itemsize):
    """Per-grid-step VMEM footprint: x/out double-buffered + pe (f32) double-buffered
    + the (tile_s, D) pe_scaled temporary (f32 product + narrowed copy)."""
    return tile_s * (4 * bc * d_model * itemsize            # x + out, 2 buffers each
                     + 8 * d_model                          # pe block (f32), 2 buffers
                     + d_model * (4 + itemsize))            # in-kernel pe_scaled temp


def _reduce_bc(bc, lane_dense):
    """Shrink the batch chunk while respecting the (8,128) sublane rule on the 3-D path."""
    if lane_dense:
        return max(1, bc // 2)
    if bc <= 8:
        return bc
    return max(8, ((bc // 2) // 8) * 8)


# ----------------------------------------------------------------------------------------
# Kernels
# ----------------------------------------------------------------------------------------
def _pe_add_lane_kernel(scale_ref, x_ref, pe_ref, o_ref, *, n_batch, d_model):
    # Lane-dense path (D % 128 == 0).
    # scale_ref: (1, 1) f32 SMEM
    # x_ref/o_ref: (tile_s, n_batch * D) VMEM (lane-dense, full-lane stores)
    # pe_ref   : (tile_s, D) VMEM (f32 table block)
    pe_scaled = (scale_ref[0, 0] * pe_ref[...].astype(jnp.float32)).astype(o_ref.dtype)
    for b in range(n_batch):                       # static, lane-aligned D-wide slices
        sl = slice(b * d_model, (b + 1) * d_model)
        o_ref[:, sl] = x_ref[:, sl] + pe_scaled


def _pe_add_3d_kernel(scale_ref, x_ref, pe_ref, o_ref):
    # General path (any D).
    # x_ref/o_ref: (tile_s, bc, D); pe_ref: (tile_s, 1, D) -> sublane-axis broadcast.
    pe_scaled = (scale_ref[0, 0] * pe_ref[...].astype(jnp.float32)).astype(o_ref.dtype)
    o_ref[...] = x_ref[...] + pe_scaled


# ----------------------------------------------------------------------------------------
# Module construction + forward wrapper
# ----------------------------------------------------------------------------------------
def make_positional_encoding_table(d_model, max_len=1000, dtype=jnp.float32):
    """Sinusoidal table built exactly as the PyTorch __init__ does (requires even d_model)."""
    position = jnp.arange(0, max_len, dtype=jnp.float32)[:, None]                  # (max_len, 1)
    div_term = jnp.exp(
        jnp.arange(0, d_model, 2, dtype=jnp.float32) * (-math.log(10000.0) / d_model)
    )                                                                              # (d_model/2,)
    ang = position * div_term                                                      # (max_len, d/2)
    pe = jnp.zeros((max_len, d_model), dtype=jnp.float32)
    pe = pe.at[:, 0::2].set(jnp.sin(ang))
    pe = pe.at[:, 1::2].set(jnp.cos(ang))
    # unsqueeze(0).transpose(0, 1) -> (max_len, 1, d_model), matching the torch buffer
    return pe[:, None, :].astype(dtype)


def positional_encoding_forward(x, pe, scale, *, tile_s=None, batch_block=None):
    """x: (S, B, D); pe: (max_len, 1, D) buffer; scale: (1,) parameter.

    Computes dropout(x + scale * pe[:S]) in inference mode (dropout == identity).
    """
    S, B, D = x.shape
    max_len = pe.shape[0]
    assert S <= max_len, "sequence length exceeds positional-encoding table"
    dtype = x.dtype
    itemsize = jnp.dtype(dtype).itemsize
    sub = max(8, 32 // itemsize)                 # packed sublane tile: 8 f32 / 16 bf16 / 32 i8
    lane_dense = (D % 128 == 0)

    budget, vmem_cap = _vmem_budget()

    # --- batch chunk: shrink only if even a minimal-height tile blows the budget ----------
    bc = B if batch_block is None else min(batch_block, B)
    while _step_bytes(sub, bc, D, itemsize) > budget:
        new_bc = _reduce_bc(bc, lane_dense)
        if new_bc == bc:
            break
        bc = new_bc

    # --- seq tile: largest that fits the (fully accounted) per-step footprint -------------
    if tile_s is None:
        per_row = _step_bytes(1, bc, D, itemsize)
        tile_s = max(sub, (budget // per_row) // sub * sub)
    tile_s = min(tile_s, 1024, _round_up(S, sub))
    tile_s = max(sub, _round_up(tile_s, sub))

    ns = pl.cdiv(S, tile_s)
    nb = pl.cdiv(B, bc)
    # Give megacore (v7x) at least two grid steps when the seq axis allows it.
    if ns * nb == 1 and S > sub:
        tile_s = max(sub, _round_up(-(-S // 2), sub))
        ns = pl.cdiv(S, tile_s)
    grid = (ns, nb)

    step = _step_bytes(tile_s, bc, D, itemsize)
    vmem_limit = int(max(min(step + (4 << 20), vmem_cap), 16 << 20, step + (2 << 20)))

    scale_arr = jnp.asarray(scale, dtype=jnp.float32).reshape(1, 1)
    cparams = pltpu.CompilerParams(
        dimension_semantics=("parallel", "parallel"),
        vmem_limit_bytes=vmem_limit,
    )

    if lane_dense:
        # Lane-dense (S, B*D) view: free contiguous reshape, full-lane vst on the output.
        x2d = x.reshape(S, B * D)
        pe2d = pe.reshape(max_len, D)             # stays f32; cast per-tile in the kernel
        out2d = pl.pallas_call(
            functools.partial(_pe_add_lane_kernel, n_batch=bc, d_model=D),
            out_shape=jax.ShapeDtypeStruct((S, B * D), dtype),
            grid_spec=pltpu.PrefetchScalarGridSpec(
                num_scalar_prefetch=0,
                grid=grid,
                in_specs=[
                    pl.BlockSpec(memory_space=pltpu.SMEM),                 # scale scalar
                    pl.BlockSpec((tile_s, bc * D), lambda i, j: (i, j)),   # x tile
                    pl.BlockSpec((tile_s, D), lambda i, j: (i, 0)),        # pe tile
                ],
                out_specs=pl.BlockSpec((tile_s, bc * D), lambda i, j: (i, j)),
            ),
            compiler_params=cparams,
        )(scale_arr, x2d, pe2d)
        return out2d.reshape(S, B, D)

    # General path: 3-D blocks, pe broadcast over the batch (sublane) axis.
    out = pl.pallas_call(
        _pe_add_3d_kernel,
        out_shape=jax.ShapeDtypeStruct((S, B, D), dtype),
        grid_spec=pltpu.PrefetchScalarGridSpec(
            num_scalar_prefetch=0,
            grid=grid,
            in_specs=[
                pl.BlockSpec(memory_space=pltpu.SMEM),                     # scale scalar
                pl.BlockSpec((tile_s, bc, D), lambda i, j: (i, j, 0)),     # x tile
                pl.BlockSpec((tile_s, 1, D), lambda i, j: (i, 0, 0)),      # pe tile
            ],
            out_specs=pl.BlockSpec((tile_s, bc, D), lambda i, j: (i, j, 0)),
        ),
        compiler_params=cparams,
    )(scale_arr, x, pe)
    return out


if __name__ == "__main__":
    # Small shapes consistent with forward: (seq=8, batch=2, d_model=32)
    S, B, D = 8, 2, 32
    max_len = 1000

    key = jax.random.PRNGKey(0)
    x = jax.random.normal(key, (S, B, D), dtype=jnp.float32)

    # Deterministic parameter init matching the module's __init__:
    # scale = nn.Parameter(torch.ones(1)); pe = sinusoidal buffer
    scale = jnp.ones((1,), dtype=jnp.float32)
    pe = make_positional_encoding_table(D, max_len=max_len)

    out = jax.block_until_ready(positional_encoding_forward(x, pe, scale))
    ref = x + scale[0] * pe[:S]
    assert out.shape == (S, B, D)
    assert jnp.allclose(out, ref, atol=1e-6, rtol=1e-6), "mismatch vs reference (3-D path)"

    # Also exercise the lane-dense path (d_model multiple of 128) at small shapes.
    S2, B2, D2 = 16, 2, 128
    x2 = jax.random.normal(jax.random.PRNGKey(1), (S2, B2, D2), dtype=jnp.float32)
    pe2 = make_positional_encoding_table(D2, max_len=max_len)
    out2 = jax.block_until_ready(positional_encoding_forward(x2, pe2, scale))
    ref2 = x2 + scale[0] * pe2[:S2]
    assert jnp.allclose(out2, ref2, atol=1e-6, rtol=1e-6), "mismatch vs reference (lane path)"

    print("KERNEL_OK")
</pallas_src>

<mosaic_0001>
module attributes {stable_mosaic.version = 11 : i64} {
  func.func @_pe_add_3d_kernel(%arg0: i32, %arg1: i32, %arg2: memref<1x1xf32, #tpu.memory_space<smem>>, %arg3: memref<8x2x32xf32, #tpu.memory_space<vmem>>, %arg4: memref<8x1x32xf32, #tpu.memory_space<vmem>>, %arg5: memref<8x2x32xf32, #tpu.memory_space<vmem>>) attributes {dimension_semantics = [#tpu.dimension_semantics<parallel>, #tpu.dimension_semantics<parallel>], iteration_bounds = array<i64: 1, 1>, scalar_prefetch = 0 : i64, scratch_operands = 0 : i64, tpu.core_type = #tpu.core_type<tc>, window_params = [{transform_indices = @transform_0, window_bounds = array<i64: 1, 1>}, {transform_indices = @transform_1, window_bounds = array<i64: 8, 2, 32>}, {transform_indices = @transform_2, window_bounds = array<i64: 8, 1, 32>}, {transform_indices = @transform_3, window_bounds = array<i64: 8, 2, 32>}]} {
    %c0 = arith.constant 0 : index
    %c0_0 = arith.constant 0 : index
    %0 = memref.load %arg2[%c0, %c0_0] : memref<1x1xf32, #tpu.memory_space<smem>>
    %c0_1 = arith.constant 0 : index
    %c0_2 = arith.constant 0 : index
    %c0_3 = arith.constant 0 : index
    %1 = vector.load %arg4[%c0_1, %c0_2, %c0_3] : memref<8x1x32xf32, #tpu.memory_space<vmem>>, vector<8x1x32xf32>
    %2 = vector.broadcast %0 : f32 to vector<8x1x32xf32>
    %3 = arith.mulf %2, %1 : vector<8x1x32xf32>
    %c0_4 = arith.constant 0 : index
    %c0_5 = arith.constant 0 : index
    %c0_6 = arith.constant 0 : index
    %4 = vector.load %arg3[%c0_4, %c0_5, %c0_6] : memref<8x2x32xf32, #tpu.memory_space<vmem>>, vector<8x2x32xf32>
    %5 = vector.broadcast %3 : vector<8x1x32xf32> to vector<8x2x32xf32>
    %6 = arith.addf %4, %5 : vector<8x2x32xf32>
    %c0_7 = arith.constant 0 : index
    %c0_8 = arith.constant 0 : index
    %c0_9 = arith.constant 0 : index
    %7 = vector.load %arg5[%c0_7, %c0_8, %c0_9] : memref<8x2x32xf32, #tpu.memory_space<vmem>>, vector<8x2x32xf32>
    tpu.vector_store %arg5[%c0_7, %c0_8, %c0_9], %6 {strides = array<i32>} : memref<8x2x32xf32, #tpu.memory_space<vmem>>, vector<8x2x32xf32>,
    return
  }
  func.func @transform_0(%arg0: i32, %arg1: i32) -> (i32, i32) {
    %c0_i32 = arith.constant 0 : i32
    %c0_i32_0 = arith.constant 0 : i32
    %c0_i32_1 = arith.constant 0 : i32
    return %c0_i32, %c0_i32_0 : i32, i32
  }
  func.func @transform_1(%arg0: i32, %arg1: i32) -> (i32, i32, i32) {
    %c0_i32 = arith.constant 0 : i32
    %c0_i32_0 = arith.constant 0 : i32
    return %arg0, %arg1, %c0_i32 : i32, i32, i32
  }
  func.func @transform_2(%arg0: i32, %arg1: i32) -> (i32, i32, i32) {
    %c0_i32 = arith.constant 0 : i32
    %c0_i32_0 = arith.constant 0 : i32
    %c0_i32_1 = arith.constant 0 : i32
    return %arg0, %c0_i32, %c0_i32_0 : i32, i32, i32
  }
  func.func @transform_3(%arg0: i32, %arg1: i32) -> (i32, i32, i32) {
    %c0_i32 = arith.constant 0 : i32
    %c0_i32_0 = arith.constant 0 : i32
    return %arg0, %arg1, %c0_i32 : i32, i32, i32
  }
}

</mosaic_0001>

<bundles_post_ra>
// kernel: tpu_custom_call.1
= control target key start
LH: loop header
LB: loop body
LE: loop exit
PB: predicated region body
PF: predicated region fallthrough
CT: control target
= control target key end

     0   :  { %v50_v2 = vlaneseq  ;;  %vm98_vm0 = vcmask 254976   ;;  %s244_s0 = inlined_call_operand.<no memory space> [shape: f32[1,1], index: 0, kind: input, shape index: {}]   ;;  %s245_s1 = inlined_call_operand.vmem [shape: f32[8,2,32], index: 1, kind: input, shape index: {}]   ;;  %s246_s2 = inlined_call_operand.vmem [shape: f32[1000,1,32], index: 2, kind: input, shape index: {}]   ;;  %s247_s3 = inlined_call_operand.hbm [shape: f32[8,2,32], index: 3, kind: output, shape index: {}]  }
   0x1   :  { %v17_v0 = vld [vmem:[%s246_s2] sm:$0x1]  ;;  %v25_v1 = vstv %s244_s0  ;;  %v18_v3 = vld [vmem:[%s246_s2 + $0x1] sm:$0x1]  ;;  %v19_v4 = vld [vmem:[%s246_s2 + $0x2] sm:$0x1] }
   0x2   :  { %v26_v5 = vmul.f32 %v25_v1, %v17_v0  ;;  %v51_v6 = vshrl.u32 %v50_v2, 7  ;;  %v27_v7 = vmul.f32 %v25_v1, %v18_v3  ;;  %v28_v8 = vmul.f32 %v25_v1, %v19_v4  ;;  %v20_v9 = vld [vmem:[%s246_s2 + $0x3] sm:$0x1]  ;;  %v34_v10 = vld [vmem:[%s245_s1] sm:$0x3] }
   0x3   :  { %v35_v11 = vld [vmem:[%s245_s1 + $0x2] sm:$0x3]  ;;  %v29_v12 = vmul.f32 %v25_v1, %v20_v9  ;;  %v21_v13 = vld [vmem:[%s246_s2 + $0x4] sm:$0x1]  ;;  %v22_v17 = vld [vmem:[%s246_s2 + $0x5] sm:$0x1] }
   0x4   :  { %v52_v14 = vsub.s32 0, %v51_v6  ;;  %v36_v15 = vld [vmem:[%s245_s1 + $0x4] sm:$0x3]  ;;  %v30_v16 = vmul.f32 %v25_v1, %v21_v13  ;;  %v37_v18 = vld [vmem:[%s245_s1 + $0x6] sm:$0x3]  ;;  %v31_v19 = vmul.f32 %v25_v1, %v22_v17 }
   0x5   :  { %v23_v20 = vld [vmem:[%s246_s2 + $0x6] sm:$0x1]  ;;  %v24_v21 = vld [vmem:[%s246_s2 + $0x7] sm:$0x1]  ;;  %v38_v26 = vld [vmem:[%s245_s1 + $0x8] sm:$0x3] }
   0x6   :  { %v53_v22 = vrot.slane %v26_v5, %v52_v14  ;;  %v57_v23 = vrot.slane %v27_v7, %v52_v14  ;;  %v61_v24 = vrot.slane %v28_v8, %v52_v14  ;;  %v65_v25 = vrot.slane %v29_v12, %v52_v14  ;;  %v39_v27 = vld [vmem:[%s245_s1 + $0xa] sm:$0x3] }
   0x7   :  { %9 = vsyncpa [#allocation4], 0  ;;  %v69_v28 = vrot.slane %v30_v16, %v52_v14  ;;  %v73_v29 = vrot.slane %v31_v19, %v52_v14  ;;  %v32_v30 = vmul.f32 %v25_v1, %v23_v20  ;;  %v33_v31 = vmul.f32 %v25_v1, %v24_v21  ;;  %s150_s14 = smov [#allocation3]   ;;  %v40_v36 = vld [vmem:[%s245_s1 + $0xc] sm:$0x3] }
   0x8   :  { %s112_s15 = sshll.u32 %s150_s14, 4  ;;  %v90_v32 = vadd.f32 %v53_v22, %v34_v10  ;;  %v91_v33 = vadd.f32 %v57_v23, %v35_v11  ;;  %v92_v34 = vadd.f32 %v61_v24, %v36_v15  ;;  %v93_v35 = vadd.f32 %v65_v25, %v37_v18  ;;  %v41_v37 = vld [vmem:[%s245_s1 + $0xe] sm:$0x3]  ;;  %s113_s15 = int_to_ptr.vmem [resolvable:$true] %s112_s15 }
   0x9   :  { %v94_v38 = vadd.f32 %v69_v28, %v38_v26  ;;  %v95_v39 = vadd.f32 %v73_v29, %v39_v27  ;;  %v77_v40 = vrot.slane %v32_v30, %v52_v14  ;;  %v81_v41 = vrot.slane %v33_v31, %v52_v14  ;;  %s126_s1 = scalar_lea.vmem %s113_s15, 256  ;;  %p131_p1 = scmp.lt.s32.totalorder %s113_s15, %s113_s15 }
   0xa   :  { %99 = vst.msk [vmem:[#allocation3] sm:$0x3] %vm98_vm0, %v90_v32  ;;  %100 = vst.msk [vmem:[#allocation3 + $0x2] sm:$0x3] %vm98_vm0, %v91_v33  ;;  %p127_p0 = scmp.ne.s32.totalorder %s113_s15, %s126_s1  ;;  %p132_p2 = scmp.lt.s32.totalorder %s126_s1, %s126_s1 }
   0xb   :  { %101 = vst.msk [vmem:[#allocation3 + $0x4] sm:$0x3] %vm98_vm0, %v92_v34  ;;  %102 = vst.msk [vmem:[#allocation3 + $0x6] sm:$0x3] %vm98_vm0, %v93_v35  ;;  %v96_v42 = vadd.f32 %v77_v40, %v40_v36  ;;  %v97_v43 = vadd.f32 %v81_v41, %v41_v37 }
   0xc   :  { %103 = vst.msk [vmem:[#allocation3 + $0x8] sm:$0x3] %vm98_vm0, %v94_v38  ;;  %104 = vst.msk [vmem:[#allocation3 + $0xa] sm:$0x3] %vm98_vm0, %v95_v39  ;;  %p133_p3 = por %p132_p2, %p131_p1 }
   0xd   :  { %105 = vst.msk [vmem:[#allocation3 + $0xc] sm:$0x3] %vm98_vm0, %v96_v42  ;;  %106 = vst.msk [vmem:[#allocation3 + $0xe] sm:$0x3] %vm98_vm0, %v97_v43 }
   0xe   :  { %p134_p4 = pnand %p133_p3, %p127_p0 }
  0x10   :  { %137 = shalt.err (!%p134_p4)
}
  0x11   :  { %s138_s21 = scalar_lea.hbm %s247_s3, 256 }
  0x12   :  { %p139_p5 = scmp.ne.s32.totalorder %s247_s3, %s138_s21  ;;  %p142_p6 = scmp.lt.u32.totalorder %s138_s21, %s247_s3 }
  0x14   :  { %p144_p7 = pnand %p142_p6, %p139_p5 }
  0x16   :  { %147 = shalt.err (!%p144_p7)
}
  0x17   :  { %s151_s25 = smov 32   ;;  %s152_s26 = smov 2  }
  0x18   :  { %118 = dma.vmem_to_hbm [thread:$0]  %s113_s15, 256, %s247_s3, [#allocation4], %s151_s25, %s151_s25, %s152_s26  }
  0x19   :  { %148 = dma.done.wait [#allocation4], 256  }
  0x1a   :  { %149 = vsyncadd [#allocation4], 4294967040 }
  0x1b   :  { %122 = vsyncpa [#allocation4], 1 }

</bundles_post_ra>
